<compile_context>
chip_gen: v5e
topology: v5e:2x2
jax: 0.10.0
libtpu: 0.0.40
codegen_flags: <defaults>
</compile_context>

<pallas_src>
import functools

import jax
import jax.numpy as jnp
from jax.experimental import pallas as pl
from jax.experimental.pallas import tpu as pltpu


def _round_up(x, m):
    return ((x + m - 1) // m) * m


def q_only_branch_kernel(q_ref, w1_ref, b1_ref, w2_ref, b2_ref, out_ref):
    # Linear1 + bias + ReLU (MXU matmul, f32 accumulation).
    h = jnp.dot(q_ref[...], w1_ref[...], preferred_element_type=jnp.float32)
    h = jnp.maximum(h + b1_ref[...], 0.0)          # b1 is (1, Hp) -> row broadcast
    # Linear2 + bias. Downcast the activation only when the weights are low
    # precision (bf16 MXU path); keep full f32 when params are f32.
    w2 = w2_ref[...]
    if w2.dtype != jnp.float32:
        h = h.astype(w2.dtype)
    logits = jnp.dot(h, w2, preferred_element_type=jnp.float32)
    out_ref[...] = (logits + b2_ref[...]).astype(out_ref.dtype)


def question_only_branch(q_emb, w1, b1, w2, b2, *, block_b=256,
                         compute_dtype=None):
    """q_emb: [B, D]; w1: [D, H]; b1: [H]; w2: [H, C]; b2: [C] -> f32 [B, C].

    Pads D/H/C to multiples of 128 (lane-dense stores, full MXU columns),
    tiles the batch over the grid with weights held resident in VMEM, and
    slices the padding off on return.
    """
    B, D = q_emb.shape
    H = w1.shape[1]
    C = w2.shape[1]

    # Optional bf16 compute path.
    if compute_dtype is not None:
        q_emb = q_emb.astype(compute_dtype)
        w1 = w1.astype(compute_dtype)
        w2 = w2.astype(compute_dtype)
    # Biases are added to the f32 accumulator -> keep them f32.
    b1 = b1.astype(jnp.float32)
    b2 = b2.astype(jnp.float32)

    # Lane-dense padding: last dims to multiples of 128; batch to the tile.
    Dp = _round_up(D, 128)
    Hp = _round_up(H, 128)
    Cp = _round_up(C, 128)
    TB = min(_round_up(B, 8), block_b)   # sublane-aligned batch tile
    Bp = _round_up(B, TB)

    q_p = jnp.pad(q_emb, ((0, Bp - B), (0, Dp - D)))
    w1_p = jnp.pad(w1, ((0, Dp - D), (0, Hp - H)))
    b1_p = jnp.pad(b1, (0, Hp - H)).reshape(1, Hp)
    w2_p = jnp.pad(w2, ((0, Hp - H), (0, Cp - C)))
    b2_p = jnp.pad(b2, (0, Cp - C)).reshape(1, Cp)

    grid = (Bp // TB,)

    itm = jnp.dtype(q_p.dtype).itemsize
    cost = pl.CostEstimate(
        flops=2 * Bp * Dp * Hp + 2 * Bp * Hp * Cp,
        transcendentals=0,
        bytes_accessed=(q_p.size * itm + w1_p.size * itm + w2_p.size * itm
                        + b1_p.size * 4 + b2_p.size * 4 + Bp * Cp * 4),
    )

    out_p = pl.pallas_call(
        q_only_branch_kernel,
        out_shape=jax.ShapeDtypeStruct((Bp, Cp), jnp.float32),
        grid_spec=pltpu.PrefetchScalarGridSpec(
            num_scalar_prefetch=0,
            grid=grid,
            in_specs=[
                # q: one batch tile per grid step (double-buffered/pipelined).
                pl.BlockSpec((TB, Dp), lambda i: (i, 0)),
                # Weights / biases: constant block index -> fetched once,
                # VMEM-resident across all grid steps.
                pl.BlockSpec((Dp, Hp), lambda i: (0, 0)),
                pl.BlockSpec((1, Hp), lambda i: (0, 0)),
                pl.BlockSpec((Hp, Cp), lambda i: (0, 0)),
                pl.BlockSpec((1, Cp), lambda i: (0, 0)),
            ],
            out_specs=pl.BlockSpec((TB, Cp), lambda i: (i, 0)),
        ),
        compiler_params=pltpu.CompilerParams(
            dimension_semantics=("parallel",)),
        cost_estimate=cost,
    )(q_p, w1_p, b1_p, w2_p, b2_p)

    return out_p[:B, :C]


def _question_only_branch_xla(q_emb, w1, b1, w2, b2):
    h = jnp.maximum(q_emb.astype(jnp.float32) @ w1.astype(jnp.float32) + b1, 0.0)
    return h @ w2.astype(jnp.float32) + b2


def question_only_wrapper_forward(q_emb, params, *, use_pallas=True,
                                  compute_dtype=None):
    """Mirrors QuestionOnlyWrapper.forward's dict-style output for the
    question-only branch. main_model output omitted (opaque module).

    For very small problems (a few M FLOPs) the Pallas launch overhead
    dominates; callers can set use_pallas=False to let XLA fuse it instead.
    """
    out = {}
    if use_pallas:
        out["q_logits"] = question_only_branch(
            q_emb, params["w1"], params["b1"], params["w2"], params["b2"],
            compute_dtype=compute_dtype)
    else:
        out["q_logits"] = _question_only_branch_xla(
            q_emb, params["w1"], params["b1"], params["w2"], params["b2"])
    return out


if __name__ == "__main__":
    # Small shapes consistent with the module's constructor args.
    B = 8               # batch of questions
    q_emb_dim = 32
    q_only_hid_dim = 64
    num_classes = 16

    key = jax.random.PRNGKey(0)
    k_q, k_w1, k_b1, k_w2, k_b2 = jax.random.split(key, 5)

    q_emb = jax.random.normal(k_q, (B, q_emb_dim), dtype=jnp.float32)

    # Deterministic synthetic parameters (nn.Linear-like scales).
    params = {
        "w1": jax.random.normal(k_w1, (q_emb_dim, q_only_hid_dim),
                                dtype=jnp.float32) * (1.0 / q_emb_dim ** 0.5),
        "b1": jax.random.normal(k_b1, (q_only_hid_dim,), dtype=jnp.float32) * 0.01,
        "w2": jax.random.normal(k_w2, (q_only_hid_dim, num_classes),
                                dtype=jnp.float32) * (1.0 / q_only_hid_dim ** 0.5),
        "b2": jax.random.normal(k_b2, (num_classes,), dtype=jnp.float32) * 0.01,
    }

    fwd = jax.jit(functools.partial(question_only_wrapper_forward,
                                    use_pallas=True))
    out = fwd(q_emb, params)
    logits = jax.block_until_ready(out["q_logits"])

    # Reference check in plain JAX (f32 end-to-end, like the PyTorch module).
    ref = (jnp.maximum(q_emb @ params["w1"] + params["b1"], 0.0)
           @ params["w2"] + params["b2"])
    assert logits.shape == (B, num_classes)
    assert logits.dtype == jnp.float32
    assert jnp.allclose(logits, ref, atol=1e-5, rtol=1e-5)

    print("KERNEL_OK")
</pallas_src>

<mosaic_0001>
module attributes {stable_mosaic.version = 11 : i64} {
  func.func @q_only_branch_kernel(%arg0: i32, %arg1: memref<8x128xf32, #tpu.memory_space<vmem>>, %arg2: memref<128x128xf32, #tpu.memory_space<vmem>>, %arg3: memref<1x128xf32, #tpu.memory_space<vmem>>, %arg4: memref<128x128xf32, #tpu.memory_space<vmem>>, %arg5: memref<1x128xf32, #tpu.memory_space<vmem>>, %arg6: memref<8x128xf32, #tpu.memory_space<vmem>>) attributes {dimension_semantics = [#tpu.dimension_semantics<parallel>], iteration_bounds = array<i64: 1>, scalar_prefetch = 0 : i64, scratch_operands = 0 : i64, tpu.core_type = #tpu.core_type<tc>, window_params = [{transform_indices = @transform_0, window_bounds = array<i64: 8, 128>}, {pipeline_mode = #tpu.pipeline_mode<synchronous>, transform_indices = @transform_1, window_bounds = array<i64: 128, 128>}, {pipeline_mode = #tpu.pipeline_mode<synchronous>, transform_indices = @transform_2, window_bounds = array<i64: 1, 128>}, {pipeline_mode = #tpu.pipeline_mode<synchronous>, transform_indices = @transform_3, window_bounds = array<i64: 128, 128>}, {pipeline_mode = #tpu.pipeline_mode<synchronous>, transform_indices = @transform_4, window_bounds = array<i64: 1, 128>}, {transform_indices = @transform_5, window_bounds = array<i64: 8, 128>}]} {
    %c0 = arith.constant 0 : index
    %c0_0 = arith.constant 0 : index
    %0 = vector.load %arg1[%c0, %c0_0] : memref<8x128xf32, #tpu.memory_space<vmem>>, vector<8x128xf32>
    %c0_1 = arith.constant 0 : index
    %c0_2 = arith.constant 0 : index
    %1 = vector.load %arg2[%c0_1, %c0_2] : memref<128x128xf32, #tpu.memory_space<vmem>>, vector<128x128xf32>
    %cst = arith.constant dense<0.000000e+00> : vector<8x128xf32>
    %2 = tpu.matmul %0, %1, %cst {dimension_numbers = #tpu.dot_dimension_numbers<[1], [0], [0], [1], [0, 0, 1, 1], [], []>} : vector<8x128xf32>, vector<128x128xf32>, vector<8x128xf32> -> vector<8x128xf32>
    %c0_3 = arith.constant 0 : index
    %c0_4 = arith.constant 0 : index
    %3 = vector.load %arg3[%c0_3, %c0_4] : memref<1x128xf32, #tpu.memory_space<vmem>>, vector<1x128xf32>
    %4 = vector.broadcast %3 : vector<1x128xf32> to vector<8x128xf32>
    %5 = arith.addf %2, %4 : vector<8x128xf32>
    %cst_5 = arith.constant 0.000000e+00 : f32
    %6 = vector.broadcast %cst_5 : f32 to vector<8x128xf32>
    %7 = arith.maximumf %5, %6 : vector<8x128xf32>
    %c0_6 = arith.constant 0 : index
    %c0_7 = arith.constant 0 : index
    %8 = vector.load %arg4[%c0_6, %c0_7] : memref<128x128xf32, #tpu.memory_space<vmem>>, vector<128x128xf32>
    %cst_8 = arith.constant dense<0.000000e+00> : vector<8x128xf32>
    %9 = tpu.matmul %7, %8, %cst_8 {dimension_numbers = #tpu.dot_dimension_numbers<[1], [0], [0], [1], [0, 0, 1, 1], [], []>} : vector<8x128xf32>, vector<128x128xf32>, vector<8x128xf32> -> vector<8x128xf32>
    %c0_9 = arith.constant 0 : index
    %c0_10 = arith.constant 0 : index
    %10 = vector.load %arg5[%c0_9, %c0_10] : memref<1x128xf32, #tpu.memory_space<vmem>>, vector<1x128xf32>
    %11 = vector.broadcast %10 : vector<1x128xf32> to vector<8x128xf32>
    %12 = arith.addf %9, %11 : vector<8x128xf32>
    %c0_11 = arith.constant 0 : index
    %c0_12 = arith.constant 0 : index
    %13 = vector.load %arg6[%c0_11, %c0_12] : memref<8x128xf32, #tpu.memory_space<vmem>>, vector<8x128xf32>
    tpu.vector_store %arg6[%c0_11, %c0_12], %12 {strides = array<i32>} : memref<8x128xf32, #tpu.memory_space<vmem>>, vector<8x128xf32>,
    return
  }
  func.func @transform_0(%arg0: i32) -> (i32, i32) {
    %c0_i32 = arith.constant 0 : i32
    %c0_i32_0 = arith.constant 0 : i32
    return %arg0, %c0_i32 : i32, i32
  }
  func.func @transform_1(%arg0: i32) -> (i32, i32) {
    %c0_i32 = arith.constant 0 : i32
    %c0_i32_0 = arith.constant 0 : i32
    %c0_i32_1 = arith.constant 0 : i32
    return %c0_i32, %c0_i32_0 : i32, i32
  }
  func.func @transform_2(%arg0: i32) -> (i32, i32) {
    %c0_i32 = arith.constant 0 : i32
    %c0_i32_0 = arith.constant 0 : i32
    %c0_i32_1 = arith.constant 0 : i32
    return %c0_i32, %c0_i32_0 : i32, i32
  }
  func.func @transform_3(%arg0: i32) -> (i32, i32) {
    %c0_i32 = arith.constant 0 : i32
    %c0_i32_0 = arith.constant 0 : i32
    %c0_i32_1 = arith.constant 0 : i32
    return %c0_i32, %c0_i32_0 : i32, i32
  }
  func.func @transform_4(%arg0: i32) -> (i32, i32) {
    %c0_i32 = arith.constant 0 : i32
    %c0_i32_0 = arith.constant 0 : i32
    %c0_i32_1 = arith.constant 0 : i32
    return %c0_i32, %c0_i32_0 : i32, i32
  }
  func.func @transform_5(%arg0: i32) -> (i32, i32) {
    %c0_i32 = arith.constant 0 : i32
    %c0_i32_0 = arith.constant 0 : i32
    return %arg0, %c0_i32 : i32, i32
  }
}

</mosaic_0001>

<bundles_post_ra>
// kernel: question_only_wrapper_forward.1
= control target key start
LH: loop header
LB: loop body
LE: loop exit
PB: predicated region body
PF: predicated region fallthrough
CT: control target
= control target key end

     0   :  { %s288_s0 = inlined_call_operand.vmem [shape: f32[8,128], index: 0, kind: input, shape index: {}]   ;;  %s289_s1 = inlined_call_operand.vmem [shape: f32[128,128], index: 1, kind: input, shape index: {}]   ;;  %s290_s2 = inlined_call_operand.vmem [shape: f32[1,128], index: 2, kind: input, shape index: {}]   ;;  %s291_s3 = inlined_call_operand.vmem [shape: f32[128,128], index: 3, kind: input, shape index: {}]   ;;  %s292_s4 = inlined_call_operand.vmem [shape: f32[1,128], index: 4, kind: input, shape index: {}]   ;;  %s293_s5 = inlined_call_operand.hbm [shape: f32[8,128], index: 5, kind: output, shape index: {}]  }
   0x1   :  { %v37_v0 = vld [vmem:[%s289_s1 + $0x78] sm:$0xff]  ;;  %v36_v1 = vld [vmem:[%s289_s1 + $0x70] sm:$0xff]  ;;  %v35_v2 = vld [vmem:[%s289_s1 + $0x68] sm:$0xff] }
   0x2   :  { %42 = vmatpush.msra.mxu0 %v37_v0  ;;  %v34_v3 = vld [vmem:[%s289_s1 + $0x60] sm:$0xff]  ;;  %v78_v4 = vld [vmem:[%s291_s3 + $0x78] sm:$0xff]  ;;  %v77_v6 = vld [vmem:[%s291_s3 + $0x70] sm:$0xff] }
   0x3   :  { %v33_v5 = vld [vmem:[%s289_s1 + $0x58] sm:$0xff]  ;;  %83 = vmatpush.msra.mxu1 %v78_v4  ;;  %v76_v7 = vld [vmem:[%s291_s3 + $0x68] sm:$0xff]  ;;  %v32_v8 = vld [vmem:[%s289_s1 + $0x50] sm:$0xff] }
   0x4   :  { %43 = vmatpush.msra.mxu0 %v36_v1  ;;  %v75_v9 = vld [vmem:[%s291_s3 + $0x60] sm:$0xff]  ;;  %v31_v10 = vld [vmem:[%s289_s1 + $0x48] sm:$0xff]  ;;  %v74_v11 = vld [vmem:[%s291_s3 + $0x58] sm:$0xff] }
   0x5   :  { %84 = vmatpush.msra.mxu1 %v77_v6 }
   0x6   :  { %44 = vmatpush.msra.mxu0 %v35_v2 }
   0x7   :  { %85 = vmatpush.msra.mxu1 %v76_v7 }
   0x8   :  { %45 = vmatpush.msra.mxu0 %v34_v3 }
   0xa   :  { %46 = vmatpush.msra.mxu0 %v33_v5 }
   0xc   :  { %47 = vmatpush.msra.mxu0 %v32_v8 }
   0xd   :  { %10 = vsyncpa [#allocation3], 0  ;;  %v30_v12 = vld [vmem:[%s289_s1 + $0x40] sm:$0xff]  ;;  %86 = vmatpush.msra.mxu1 %v75_v9  ;;  %v73_v13 = vld [vmem:[%s291_s3 + $0x50] sm:$0xff]  ;;  %s149_s11 = smov [#allocation2]   ;;  %s111_s15 = sshll.u32 %s293_s5, 4  ;;  %s112_s15 = int_to_ptr.hbm [resolvable:$true] %s111_s15 }
   0xe   :  { %48 = vmatpush.msra.mxu0 %v31_v10  ;;  %v29_v14 = vld [vmem:[%s289_s1 + $0x38] sm:$0xff]  ;;  %v72_v15 = vld [vmem:[%s291_s3 + $0x48] sm:$0xff]  ;;  %v28_v16 = vld [vmem:[%s289_s1 + $0x30] sm:$0xff]  ;;  %s109_s12 = sshll.u32 %s149_s11, 4  ;;  %s110_s12 = int_to_ptr.vmem [resolvable:$true] %s109_s12 }
   0xf   :  { %87 = vmatpush.msra.mxu1 %v74_v11  ;;  %v71_v17 = vld [vmem:[%s291_s3 + $0x40] sm:$0xff]  ;;  %v27_v18 = vld [vmem:[%s289_s1 + $0x28] sm:$0xff]  ;;  %v70_v19 = vld [vmem:[%s291_s3 + $0x38] sm:$0xff] }
  0x10   :  { %49 = vmatpush.msra.mxu0 %v30_v12  ;;  %v26_v20 = vld [vmem:[%s289_s1 + $0x20] sm:$0xff]  ;;  %v69_v21 = vld [vmem:[%s291_s3 + $0x30] sm:$0xff]  ;;  %v25_v22 = vld [vmem:[%s289_s1 + $0x18] sm:$0xff] }
  0x11   :  { %88 = vmatpush.msra.mxu1 %v73_v13  ;;  %v68_v23 = vld [vmem:[%s291_s3 + $0x28] sm:$0xff]  ;;  %v24_v24 = vld [vmem:[%s289_s1 + $0x10] sm:$0xff]  ;;  %v67_v25 = vld [vmem:[%s291_s3 + $0x20] sm:$0xff] }
  0x12   :  { %50 = vmatpush.msra.mxu0 %v29_v14  ;;  %v23_v26 = vld [vmem:[%s289_s1 + $0x8] sm:$0xff]  ;;  %v66_v27 = vld [vmem:[%s291_s3 + $0x18] sm:$0xff]  ;;  %v22_v28 = vld [vmem:[%s289_s1] sm:$0xff] }
  0x13   :  { %89 = vmatpush.msra.mxu1 %v72_v15  ;;  %v21_v29 = vld [vmem:[%s288_s0] sm:$0xff]  ;;  %v65_v30 = vld [vmem:[%s291_s3 + $0x10] sm:$0xff]  ;;  %v64_v31 = vld [vmem:[%s291_s3 + $0x8] sm:$0xff] }
  0x14   :  { %51 = vmatpush.msra.mxu0 %v28_v16  ;;  %v63_v32 = vld [vmem:[%s291_s3] sm:$0xff] }
  0x15   :  { %90 = vmatpush.msra.mxu1 %v71_v17  ;;  %v121_v33 = vld [vmem:[%s290_s2] ss:$0 sm:$0xff] }
  0x16   :  { %52 = vmatpush.msra.mxu0 %v27_v18  ;;  %v122_v37 = vld [vmem:[%s292_s4] ss:$0 sm:$0xff] }
  0x17   :  { %91 = vmatpush.msra.mxu1 %v70_v19 }
  0x18   :  { %53 = vmatpush.msra.mxu0 %v26_v20 }
  0x19   :  { %92 = vmatpush.msra.mxu1 %v69_v21 }
  0x1a   :  { %54 = vmatpush.msra.mxu0 %v25_v22 }
  0x1b   :  { %93 = vmatpush.msra.mxu1 %v68_v23 }
  0x1c   :  { %55 = vmatpush.msra.mxu0 %v24_v24 }
  0x1d   :  { %94 = vmatpush.msra.mxu1 %v67_v25 }
  0x1e   :  { %56 = vmatpush.msra.mxu0 %v23_v26 }
  0x1f   :  { %95 = vmatpush.msra.mxu1 %v66_v27 }
  0x20   :  { %57 = vmatpush.msra.mxu0 %v22_v28 }
  0x21   :  { %58 = vmatmul.f32.vlgmr.msra.gmra.mxu0 %v21_v29  ;;  %96 = vmatpush.msra.mxu1 %v65_v30 }
  0x23   :  { %97 = vmatpush.msra.mxu1 %v64_v31 }
  0x25   :  { %98 = vmatpush.msra.mxu1 %v63_v32 }
  0x9e   :  { %v59_v34 = vpop.f32.mrf.mxu0 }
  0x9f   :  { %v60_v35 = vadd.f32 %v121_v33, %v59_v34 }
  0xa1   :  { %v62_v36 = vmax.f32 %v60_v35, 0.0 }
  0xa3   :  { %99 = vmatmul.f32.vlgmr.msra.gmra.mxu1 %v62_v36 }
 0x120   :  { %v100_v38 = vpop.f32.mrf.mxu1 }
 0x121   :  { %v101_v39 = vadd.f32 %v122_v37, %v100_v38 }
 0x123   :  { %103 = vst [vmem:[#allocation2] sm:$0xff] %v101_v39 }
 0x124   :  { %114 = dma.vmem_to_hbm [thread:$0]  %s110_s12, 128, %s112_s15, [#allocation3]  }
 0x125   :  { %147 = dma.done.wait [#allocation3], 128  }
 0x126   :  { %148 = vsyncadd [#allocation3], 4294967168 }
 0x127   :  { %119 = vsyncpa [#allocation3], 1 }

</bundles_post_ra>
